<compile_context>
chip_gen: v7x
topology: tpu7x:2x2x1
jax: 0.10.0
libtpu: 0.0.40
codegen_flags: <defaults>
</compile_context>

<pallas_src>
import functools

import jax
import jax.numpy as jnp
from jax.experimental import pallas as pl
from jax.experimental.pallas import tpu as pltpu


def _round_up(n, m):
    return ((n + m - 1) // m) * m


def _decoder_kernel(n_layers, Hp, V, tile_v,
                    x_ref, h_ref, w_rz_ref, w_in_ref, w_hn_ref,
                    b_rz_ref, b_in_ref, b_hn_ref, w_out_ref, b_out_ref,
                    logp_ref, hout_ref,
                    out_sc, logits_sc):
    """relu + GRU cell (seq_len=1) on grid step 0; vocab-tiled projection +
    final log-softmax across the V grid axis."""
    j = pl.program_id(0)
    Bp = x_ref.shape[0]

    # ---- GRU (runs once, on the first vocab tile) ----
    @pl.when(j == 0)
    def _gru():
        h = h_ref[...]                                      # (Bp, Hp) f32
        out = x_ref[...]                                    # (Bp, Hp) f32
        # hoisted bias broadcasts (JAX does not CSE broadcast_in_dim)
        b_rz = jnp.broadcast_to(b_rz_ref[...], (Bp, 2 * Hp))
        b_in = jnp.broadcast_to(b_in_ref[...], (Bp, Hp))
        b_hn = jnp.broadcast_to(b_hn_ref[...], (Bp, Hp))
        w_rz = w_rz_ref[...]                                # (2Hp, 2Hp) bf16
        w_in = w_in_ref[...]                                # (Hp, Hp)  bf16
        w_hn = w_hn_ref[...]                                # (Hp, Hp)  bf16
        for _ in range(n_layers):                           # static trace-time loop
            xr = jnp.maximum(out, 0.0)                      # F.relu
            # fused r/z pre-activations: [relu(x) | h] @ W_rz  (one MXU push)
            xh = jnp.concatenate([xr, h], axis=1).astype(jnp.bfloat16)
            g_rz = jnp.dot(xh, w_rz, preferred_element_type=jnp.float32) + b_rz
            r = jax.nn.sigmoid(g_rz[:, :Hp])                # 128-aligned slices
            z = jax.nn.sigmoid(g_rz[:, Hp:])
            gi_n = jnp.dot(xr.astype(jnp.bfloat16), w_in,
                           preferred_element_type=jnp.float32) + b_in
            gh_n = jnp.dot(h.astype(jnp.bfloat16), w_hn,
                           preferred_element_type=jnp.float32) + b_hn
            n = jnp.tanh(gi_n + r * gh_n)
            h = (1.0 - z) * n + z * h                       # GRU new hidden (f32)
            out = h                                         # seq_len == 1
        hout_ref[...] = h
        out_sc[...] = h                                     # persists across grid steps

    # ---- output projection for this vocab tile (streamed w_out block) ----
    out_bf = out_sc[...].astype(jnp.bfloat16)
    logits = jnp.dot(out_bf, w_out_ref[...],
                     preferred_element_type=jnp.float32) + b_out_ref[...]
    col = j * tile_v + jax.lax.broadcasted_iota(jnp.int32, logits.shape, 1)
    logits = jnp.where(col < V, logits, -1e30)              # mask padded vocab cols
    start = pl.multiple_of(j * tile_v, tile_v)
    logits_sc[:, pl.ds(start, tile_v)] = logits

    # ---- finalize log-softmax over the full resident logits ----
    @pl.when(j == pl.num_programs(0) - 1)
    def _finalize():
        lg = logits_sc[...]
        m = jnp.max(lg, axis=1, keepdims=True)
        lse = m + jnp.log(jnp.sum(jnp.exp(lg - m), axis=1, keepdims=True))
        logp_ref[...] = lg - lse                            # single lane-dense store


def prepare_params(raw, tile_v=128):
    """Pack PyTorch-layout f32 params into padded, bf16, kernel-layout params."""
    H = raw["w_hh"].shape[1]
    V = raw["w_out"].shape[0]
    Hp = _round_up(H, 128)
    Vp = _round_up(V, tile_v)

    def padT(w):                       # (out, in) -> padded (in, out) = (Hp, Hp)
        return jnp.pad(w.T, ((0, Hp - w.shape[1]), (0, Hp - w.shape[0])))

    def pad_b(b):
        return jnp.pad(b, (0, Hp - b.shape[0]))[None, :]

    w_ih, w_hh = raw["w_ih"], raw["w_hh"]                    # (3H, H), gates [r|z|n]
    w_ir, w_iz, w_in_ = w_ih[:H], w_ih[H:2 * H], w_ih[2 * H:]
    w_hr, w_hz, w_hn_ = w_hh[:H], w_hh[H:2 * H], w_hh[2 * H:]

    # fused r/z weight: [relu(x) | h] @ w_rz -> [r_pre | z_pre]
    w_rz = jnp.concatenate(
        [jnp.concatenate([padT(w_ir), padT(w_iz)], axis=1),
         jnp.concatenate([padT(w_hr), padT(w_hz)], axis=1)], axis=0)  # (2Hp, 2Hp)

    b_ih, b_hh = raw["b_ih"], raw["b_hh"]
    b_rz = jnp.concatenate([pad_b(b_ih[:H] + b_hh[:H]),
                            pad_b(b_ih[H:2 * H] + b_hh[H:2 * H])], axis=1)

    w_out = jnp.pad(raw["w_out"].T, ((0, Hp - H), (0, Vp - V)))       # (Hp, Vp)
    b_out = jnp.pad(raw["b_out"], (0, Vp - V))[None, :]               # (1, Vp)

    return dict(
        embedding=jnp.pad(raw["embedding"], ((0, 0), (0, Hp - H))).astype(jnp.float32),
        w_rz=w_rz.astype(jnp.bfloat16),
        w_in=padT(w_in_).astype(jnp.bfloat16),
        w_hn=padT(w_hn_).astype(jnp.bfloat16),
        b_rz=b_rz.astype(jnp.float32),
        b_in=pad_b(b_ih[2 * H:]).astype(jnp.float32),
        b_hn=pad_b(b_hh[2 * H:]).astype(jnp.float32),
        w_out=w_out.astype(jnp.bfloat16),
        b_out=b_out.astype(jnp.float32),
        H=H, Hp=Hp, V=V, Vp=Vp, tile_v=tile_v,
    )


def decoder_rnn_forward(kp, input_ids, hidden, encoder_outputs=None,
                        max_length=None, n_layers=1):
    """Mirrors DecoderRNN.forward(input, hidden, encoder_outputs, max_length).

    input_ids: (B,) int32;  hidden: (1, B, H) f32.
    Returns (log_probs (B, V), hidden (1, B, H), None).
    encoder_outputs / max_length are unused by the reference forward().
    """
    H, Hp, V, Vp, tile_v = kp["H"], kp["Hp"], kp["V"], kp["Vp"], kp["tile_v"]
    B = input_ids.shape[0]
    Bp = _round_up(max(B, 8), 8)

    # Embedding lookup is gather glue; done in plain JAX (rows already H-padded).
    # TODO(synk): for multi-token autoregressive decode, move the time loop into
    # the kernel (weights resident in VMEM across steps) and fetch embedding rows
    # via scalar-prefetched ids + in-kernel DMA instead of one pallas_call/token.
    emb = jnp.pad(kp["embedding"][input_ids], ((0, Bp - B), (0, 0)))
    h0 = jnp.pad(hidden[0].astype(jnp.float32), ((0, Bp - B), (0, Hp - H)))

    num_tiles = Vp // tile_v
    kernel = functools.partial(_decoder_kernel, n_layers, Hp, V, tile_v)

    def fixed(shape):
        nd = len(shape)
        return pl.BlockSpec(shape, lambda j, nd=nd: (0,) * nd)

    in_specs = [
        fixed((Bp, Hp)),                                  # embedded input
        fixed((Bp, Hp)),                                  # previous hidden
        fixed((2 * Hp, 2 * Hp)),                          # fused r/z weight
        fixed((Hp, Hp)),                                  # w_ih (n gate)
        fixed((Hp, Hp)),                                  # w_hh (n gate)
        fixed((1, 2 * Hp)),                               # fused r/z bias
        fixed((1, Hp)),                                   # b_ih (n gate)
        fixed((1, Hp)),                                   # b_hh (n gate)
        pl.BlockSpec((Hp, tile_v), lambda j: (0, j)),     # w_out: streamed over V
        pl.BlockSpec((1, tile_v), lambda j: (0, j)),      # b_out: streamed over V
    ]
    out_specs = (
        pl.BlockSpec((Bp, Vp), lambda j: (0, 0)),         # log-probs (resident)
        pl.BlockSpec((Bp, Hp), lambda j: (0, 0)),         # new hidden (resident)
    )
    scratch_shapes = [
        pltpu.VMEM((Bp, Hp), jnp.float32),                # GRU output (persists)
        pltpu.VMEM((Bp, Vp), jnp.float32),                # logits accumulator
    ]

    # VMEM budget: 2x every block (double buffering) + scratch + slack.
    blk_bytes = (
        3 * Bp * Hp * 4                                   # emb, h0, hout
        + (4 * Hp * Hp + 2 * Hp * Hp) * 2                 # w_rz, w_in, w_hn (bf16)
        + 4 * Hp * 4                                      # biases
        + Hp * tile_v * 2 + tile_v * 4                    # w_out / b_out tiles
        + Bp * Vp * 4)                                    # logp output
    scratch_bytes = Bp * Hp * 4 + Bp * Vp * 4
    vmem_limit = min(128 * 1024 * 1024,
                     max(int(2 * blk_bytes + scratch_bytes + (8 << 20)),
                         32 * 1024 * 1024))

    flops = 2 * Bp * (n_layers * (2 * Hp * 2 * Hp + 2 * Hp * Hp) + Hp * Vp)
    cost = pl.CostEstimate(
        flops=int(flops),
        transcendentals=int(Bp * (3 * Hp * n_layers + Vp)),
        bytes_accessed=int(blk_bytes + Bp * (Hp + Vp) * 4),
    )

    logp, h_new = pl.pallas_call(
        kernel,
        grid=(num_tiles,),
        in_specs=in_specs,
        out_specs=out_specs,
        out_shape=(jax.ShapeDtypeStruct((Bp, Vp), jnp.float32),
                   jax.ShapeDtypeStruct((Bp, Hp), jnp.float32)),
        scratch_shapes=scratch_shapes,
        compiler_params=pltpu.CompilerParams(
            dimension_semantics=("arbitrary",),
            vmem_limit_bytes=vmem_limit),
        cost_estimate=cost,
    )(emb, h0, kp["w_rz"], kp["w_in"], kp["w_hn"],
      kp["b_rz"], kp["b_in"], kp["b_hn"], kp["w_out"], kp["b_out"])

    return logp[:B, :V], h_new[:B, :H][None], None


def init_params(key, hidden_size, output_size):
    """Deterministic synthetic parameters in PyTorch layout ([r|z|n] gate order)."""
    ks = jax.random.split(key, 7)
    s = 1.0 / jnp.sqrt(jnp.float32(hidden_size))
    return dict(
        embedding=jax.random.normal(ks[0], (output_size, hidden_size), jnp.float32),
        w_ih=jax.random.uniform(ks[1], (3 * hidden_size, hidden_size), jnp.float32, -s, s),
        w_hh=jax.random.uniform(ks[2], (3 * hidden_size, hidden_size), jnp.float32, -s, s),
        b_ih=jax.random.uniform(ks[3], (3 * hidden_size,), jnp.float32, -s, s),
        b_hh=jax.random.uniform(ks[4], (3 * hidden_size,), jnp.float32, -s, s),
        w_out=jax.random.uniform(ks[5], (output_size, hidden_size), jnp.float32, -s, s),
        b_out=jax.random.uniform(ks[6], (output_size,), jnp.float32, -s, s),
    )


def _reference_forward(raw, input_ids, hidden, n_layers=1):
    """Pure-JAX reference mirroring the kernel's bf16-weight / f32-gate math."""
    H = hidden.shape[-1]
    bf = lambda a: a.astype(jnp.bfloat16)
    w_ih_t, w_hh_t = raw["w_ih"].T, raw["w_hh"].T            # (H, 3H)
    out = raw["embedding"][input_ids]
    h = hidden[0].astype(jnp.float32)
    for _ in range(n_layers):
        xr = jnp.maximum(out, 0.0)
        gi = jnp.dot(bf(xr), bf(w_ih_t), preferred_element_type=jnp.float32) + raw["b_ih"][None]
        gh = jnp.dot(bf(h), bf(w_hh_t), preferred_element_type=jnp.float32) + raw["b_hh"][None]
        r = jax.nn.sigmoid(gi[:, :H] + gh[:, :H])
        z = jax.nn.sigmoid(gi[:, H:2 * H] + gh[:, H:2 * H])
        n = jnp.tanh(gi[:, 2 * H:] + r * gh[:, 2 * H:])
        h = (1.0 - z) * n + z * h
        out = h
    logits = jnp.dot(bf(out), bf(raw["w_out"].T),
                     preferred_element_type=jnp.float32) + raw["b_out"][None]
    return jax.nn.log_softmax(logits, axis=1), h[None]


def _run_case(key, hidden_size, output_size, batch, n_layers, zero_hidden):
    kp_key, ki, kh = jax.random.split(key, 3)
    raw = init_params(kp_key, hidden_size, output_size)
    kp = prepare_params(raw, tile_v=128)

    input_ids = jax.random.randint(ki, (batch,), 0, output_size, dtype=jnp.int32)
    if zero_hidden:
        hidden = jnp.zeros((1, batch, hidden_size), jnp.float32)   # initHidden()
    else:
        hidden = 0.1 * jax.random.normal(kh, (1, batch, hidden_size), jnp.float32)
    encoder_outputs = jnp.zeros((10, hidden_size), jnp.float32)    # unused by forward()

    log_probs, hidden_new, attn = decoder_rnn_forward(
        kp, input_ids, hidden, encoder_outputs, max_length=10, n_layers=n_layers)
    jax.block_until_ready((log_probs, hidden_new))

    ref_logp, ref_h = _reference_forward(raw, input_ids, hidden, n_layers=n_layers)
    assert log_probs.shape == (batch, output_size)
    assert hidden_new.shape == (1, batch, hidden_size)
    assert attn is None
    assert jnp.allclose(log_probs, ref_logp, atol=2e-3, rtol=2e-3), \
        float(jnp.max(jnp.abs(log_probs - ref_logp)))
    assert jnp.allclose(hidden_new, ref_h, atol=2e-3, rtol=2e-3), \
        float(jnp.max(jnp.abs(hidden_new - ref_h)))


if __name__ == "__main__":
    key = jax.random.PRNGKey(0)
    k1, k2 = jax.random.split(key)

    # Case 1: tiny shapes (single vocab tile), zero initial hidden.
    _run_case(k1, hidden_size=32, output_size=64, batch=2, n_layers=1,
              zero_hidden=True)

    # Case 2: odd sizes exercising padding/masking + multi-tile vocab grid
    # (Vp = 384 -> 3 vocab tiles) and the n_layers loop.
    _run_case(k2, hidden_size=48, output_size=300, batch=3, n_layers=2,
              zero_hidden=False)

    print("KERNEL_OK")
</pallas_src>

<mosaic_0001>
module attributes {stable_mosaic.version = 11 : i64} {
  func.func @_decoder_kernel(%arg0: i32, %arg1: memref<8x128xf32, #tpu.memory_space<vmem>>, %arg2: memref<8x128xf32, #tpu.memory_space<vmem>>, %arg3: memref<256x256xbf16, #tpu.memory_space<vmem>>, %arg4: memref<128x128xbf16, #tpu.memory_space<vmem>>, %arg5: memref<128x128xbf16, #tpu.memory_space<vmem>>, %arg6: memref<1x256xf32, #tpu.memory_space<vmem>>, %arg7: memref<1x128xf32, #tpu.memory_space<vmem>>, %arg8: memref<1x128xf32, #tpu.memory_space<vmem>>, %arg9: memref<128x128xbf16, #tpu.memory_space<vmem>>, %arg10: memref<1x128xf32, #tpu.memory_space<vmem>>, %arg11: memref<8x128xf32, #tpu.memory_space<vmem>>, %arg12: memref<8x128xf32, #tpu.memory_space<vmem>>, %arg13: memref<8x128xf32, #tpu.memory_space<vmem>>, %arg14: memref<8x128xf32, #tpu.memory_space<vmem>>) attributes {dimension_semantics = [#tpu.dimension_semantics<arbitrary>], iteration_bounds = array<i64: 1>, scalar_prefetch = 0 : i64, scratch_operands = 2 : i64, tpu.core_type = #tpu.core_type<tc>, window_params = [{pipeline_mode = #tpu.pipeline_mode<synchronous>, transform_indices = @transform_0, window_bounds = array<i64: 8, 128>}, {pipeline_mode = #tpu.pipeline_mode<synchronous>, transform_indices = @transform_1, window_bounds = array<i64: 8, 128>}, {pipeline_mode = #tpu.pipeline_mode<synchronous>, transform_indices = @transform_2, window_bounds = array<i64: 256, 256>}, {pipeline_mode = #tpu.pipeline_mode<synchronous>, transform_indices = @transform_3, window_bounds = array<i64: 128, 128>}, {pipeline_mode = #tpu.pipeline_mode<synchronous>, transform_indices = @transform_4, window_bounds = array<i64: 128, 128>}, {pipeline_mode = #tpu.pipeline_mode<synchronous>, transform_indices = @transform_5, window_bounds = array<i64: 1, 256>}, {pipeline_mode = #tpu.pipeline_mode<synchronous>, transform_indices = @transform_6, window_bounds = array<i64: 1, 128>}, {pipeline_mode = #tpu.pipeline_mode<synchronous>, transform_indices = @transform_7, window_bounds = array<i64: 1, 128>}, {transform_indices = @transform_8, window_bounds = array<i64: 128, 128>}, {transform_indices = @transform_9, window_bounds = array<i64: 1, 128>}, {pipeline_mode = #tpu.pipeline_mode<synchronous>, transform_indices = @transform_10, window_bounds = array<i64: 8, 128>}, {pipeline_mode = #tpu.pipeline_mode<synchronous>, transform_indices = @transform_11, window_bounds = array<i64: 8, 128>}]} {
    %c0_i32 = arith.constant 0 : i32
    %0 = arith.cmpi eq, %arg0, %c0_i32 : i32
    %1 = arith.extui %0 : i1 to i32
    %c0_i32_0 = arith.constant 0 : i32
    %2 = arith.cmpi ne, %1, %c0_i32_0 : i32
    scf.if %2 {
      %c0_11 = arith.constant 0 : index
      %c0_12 = arith.constant 0 : index
      %25 = vector.load %arg2[%c0_11, %c0_12] : memref<8x128xf32, #tpu.memory_space<vmem>>, vector<8x128xf32>
      %c0_13 = arith.constant 0 : index
      %c0_14 = arith.constant 0 : index
      %26 = vector.load %arg1[%c0_13, %c0_14] : memref<8x128xf32, #tpu.memory_space<vmem>>, vector<8x128xf32>
      %c0_15 = arith.constant 0 : index
      %c0_16 = arith.constant 0 : index
      %27 = vector.load %arg6[%c0_15, %c0_16] : memref<1x256xf32, #tpu.memory_space<vmem>>, vector<1x256xf32>
      %28 = vector.shape_cast %27 : vector<1x256xf32> to vector<1x256xf32>
      %29 = vector.broadcast %28 : vector<1x256xf32> to vector<8x256xf32>
      %c0_17 = arith.constant 0 : index
      %c0_18 = arith.constant 0 : index
      %30 = vector.load %arg7[%c0_17, %c0_18] : memref<1x128xf32, #tpu.memory_space<vmem>>, vector<1x128xf32>
      %31 = vector.shape_cast %30 : vector<1x128xf32> to vector<1x128xf32>
      %32 = vector.broadcast %31 : vector<1x128xf32> to vector<8x128xf32>
      %c0_19 = arith.constant 0 : index
      %c0_20 = arith.constant 0 : index
      %33 = vector.load %arg8[%c0_19, %c0_20] : memref<1x128xf32, #tpu.memory_space<vmem>>, vector<1x128xf32>
      %34 = vector.shape_cast %33 : vector<1x128xf32> to vector<1x128xf32>
      %35 = vector.broadcast %34 : vector<1x128xf32> to vector<8x128xf32>
      %c0_21 = arith.constant 0 : index
      %c0_22 = arith.constant 0 : index
      %36 = vector.load %arg3[%c0_21, %c0_22] : memref<256x256xbf16, #tpu.memory_space<vmem>>, vector<256x256xbf16>
      %c0_23 = arith.constant 0 : index
      %c0_24 = arith.constant 0 : index
      %37 = vector.load %arg4[%c0_23, %c0_24] : memref<128x128xbf16, #tpu.memory_space<vmem>>, vector<128x128xbf16>
      %c0_25 = arith.constant 0 : index
      %c0_26 = arith.constant 0 : index
      %38 = vector.load %arg5[%c0_25, %c0_26] : memref<128x128xbf16, #tpu.memory_space<vmem>>, vector<128x128xbf16>
      %cst_27 = arith.constant 0.000000e+00 : f32
      %39 = vector.broadcast %cst_27 : f32 to vector<8x128xf32>
      %40 = arith.maximumf %26, %39 : vector<8x128xf32>
      %41 = tpu.concatenate %40, %25 in 1 : vector<8x128xf32>, vector<8x128xf32> -> vector<8x256xf32>
      %42 = arith.truncf %41 : vector<8x256xf32> to vector<8x256xbf16>
      %cst_28 = arith.constant dense<0.000000e+00> : vector<8x256xf32>
      %43 = tpu.matmul %42, %36, %cst_28 {dimension_numbers = #tpu.dot_dimension_numbers<[1], [0], [0], [1], [0, 0, 1, 1], [], []>} : vector<8x256xbf16>, vector<256x256xbf16>, vector<8x256xf32> -> vector<8x256xf32>
      %44 = arith.addf %43, %29 : vector<8x256xf32>
      %45 = vector.extract_strided_slice %44 {offsets = [0, 0], sizes = [8, 128], strides = [1, 1]} : vector<8x256xf32> to vector<8x128xf32>
      %46 = arith.negf %45 : vector<8x128xf32>
      %47 = math.exp %46 : vector<8x128xf32>
      %cst_29 = arith.constant 1.000000e+00 : f32
      %48 = vector.broadcast %cst_29 : f32 to vector<8x128xf32>
      %49 = arith.addf %48, %47 : vector<8x128xf32>
      %50 = arith.divf %48, %49 : vector<8x128xf32>
      %51 = vector.extract_strided_slice %44 {offsets = [0, 128], sizes = [8, 128], strides = [1, 1]} : vector<8x256xf32> to vector<8x128xf32>
      %52 = arith.negf %51 : vector<8x128xf32>
      %53 = math.exp %52 : vector<8x128xf32>
      %cst_30 = arith.constant 1.000000e+00 : f32
      %54 = vector.broadcast %cst_30 : f32 to vector<8x128xf32>
      %55 = arith.addf %54, %53 : vector<8x128xf32>
      %56 = arith.divf %54, %55 : vector<8x128xf32>
      %57 = arith.truncf %40 : vector<8x128xf32> to vector<8x128xbf16>
      %cst_31 = arith.constant dense<0.000000e+00> : vector<8x128xf32>
      %58 = tpu.matmul %57, %37, %cst_31 {dimension_numbers = #tpu.dot_dimension_numbers<[1], [0], [0], [1], [0, 0, 1, 1], [], []>} : vector<8x128xbf16>, vector<128x128xbf16>, vector<8x128xf32> -> vector<8x128xf32>
      %59 = arith.addf %58, %32 : vector<8x128xf32>
      %60 = arith.truncf %25 : vector<8x128xf32> to vector<8x128xbf16>
      %cst_32 = arith.constant dense<0.000000e+00> : vector<8x128xf32>
      %61 = tpu.matmul %60, %38, %cst_32 {dimension_numbers = #tpu.dot_dimension_numbers<[1], [0], [0], [1], [0, 0, 1, 1], [], []>} : vector<8x128xbf16>, vector<128x128xbf16>, vector<8x128xf32> -> vector<8x128xf32>
      %62 = arith.addf %61, %35 : vector<8x128xf32>
      %63 = arith.mulf %50, %62 : vector<8x128xf32>
      %64 = arith.addf %59, %63 : vector<8x128xf32>
      %65 = math.tanh %64 : vector<8x128xf32>
      %cst_33 = arith.constant 1.000000e+00 : f32
      %66 = vector.broadcast %cst_33 : f32 to vector<8x128xf32>
      %67 = arith.subf %66, %56 : vector<8x128xf32>
      %68 = arith.mulf %67, %65 : vector<8x128xf32>
      %69 = arith.mulf %56, %25 : vector<8x128xf32>
      %70 = arith.addf %68, %69 : vector<8x128xf32>
      %c0_34 = arith.constant 0 : index
      %c0_35 = arith.constant 0 : index
      %71 = vector.load %arg12[%c0_34, %c0_35] : memref<8x128xf32, #tpu.memory_space<vmem>>, vector<8x128xf32>
      tpu.vector_store %arg12[%c0_34, %c0_35], %70 {strides = array<i32>} : memref<8x128xf32, #tpu.memory_space<vmem>>, vector<8x128xf32>,
      %c0_36 = arith.constant 0 : index
      %c0_37 = arith.constant 0 : index
      %72 = vector.load %arg13[%c0_36, %c0_37] : memref<8x128xf32, #tpu.memory_space<vmem>>, vector<8x128xf32>
      tpu.vector_store %arg13[%c0_36, %c0_37], %70 {strides = array<i32>} : memref<8x128xf32, #tpu.memory_space<vmem>>, vector<8x128xf32>,
    } else {
    }
    %c0 = arith.constant 0 : index
    %c0_1 = arith.constant 0 : index
    %3 = vector.load %arg13[%c0, %c0_1] : memref<8x128xf32, #tpu.memory_space<vmem>>, vector<8x128xf32>
    %4 = arith.truncf %3 : vector<8x128xf32> to vector<8x128xbf16>
    %c0_2 = arith.constant 0 : index
    %c0_3 = arith.constant 0 : index
    %5 = vector.load %arg9[%c0_2, %c0_3] : memref<128x128xbf16, #tpu.memory_space<vmem>>, vector<128x128xbf16>
    %cst = arith.constant dense<0.000000e+00> : vector<8x128xf32>
    %6 = tpu.matmul %4, %5, %cst {dimension_numbers = #tpu.dot_dimension_numbers<[1], [0], [0], [1], [0, 0, 1, 1], [], []>} : vector<8x128xbf16>, vector<128x128xbf16>, vector<8x128xf32> -> vector<8x128xf32>
    %c0_4 = arith.constant 0 : index
    %c0_5 = arith.constant 0 : index
    %7 = vector.load %arg10[%c0_4, %c0_5] : memref<1x128xf32, #tpu.memory_space<vmem>>, vector<1x128xf32>
    %8 = vector.broadcast %7 : vector<1x128xf32> to vector<8x128xf32>
    %9 = arith.addf %6, %8 : vector<8x128xf32>
    %c128_i32 = arith.constant 128 : i32
    %10 = arith.muli %arg0, %c128_i32 : i32
    %11 = tpu.iota {dimensions = array<i32: 1>} : vector<8x128xi32>
    %12 = vector.broadcast %10 : i32 to vector<8x128xi32>
    %13 = arith.addi %12, %11 : vector<8x128xi32>
    %c64_i32 = arith.constant 64 : i32
    %14 = vector.broadcast %c64_i32 : i32 to vector<8x128xi32>
    %15 = arith.cmpi slt, %13, %14 : vector<8x128xi32>
    %cst_6 = arith.constant -1.000000e+30 : f32
    %16 = vector.broadcast %cst_6 : f32 to vector<8x128xf32>
    %17 = arith.select %15, %9, %16 : vector<8x128xi1>, vector<8x128xf32>
    %c128_i32_7 = arith.constant 128 : i32
    %18 = arith.muli %arg0, %c128_i32_7 : i32
    %19 = tpu.assume_multiple %18, 128 : i32
    %c0_8 = arith.constant 0 : index
    %20 = arith.index_cast %19 : i32 to index
    %21 = vector.load %arg14[%c0_8, %20] : memref<8x128xf32, #tpu.memory_space<vmem>>, vector<8x128xf32>
    tpu.vector_store %arg14[%c0_8, %20], %17 {strides = array<i32>} : memref<8x128xf32, #tpu.memory_space<vmem>>, vector<8x128xf32>,
    %c0_i32_9 = arith.constant 0 : i32
    %22 = arith.cmpi eq, %arg0, %c0_i32_9 : i32
    %23 = arith.extui %22 : i1 to i32
    %c0_i32_10 = arith.constant 0 : i32
    %24 = arith.cmpi ne, %23, %c0_i32_10 : i32
    scf.if %24 {
      %c0_11 = arith.constant 0 : index
      %c0_12 = arith.constant 0 : index
      %25 = vector.load %arg14[%c0_11, %c0_12] : memref<8x128xf32, #tpu.memory_space<vmem>>, vector<8x128xf32>
      %cst_13 = arith.constant dense<0xFF800000> : vector<8xf32>
      %26 = vector.multi_reduction <maximumf>, %25, %cst_13 [1] : vector<8x128xf32> to vector<8xf32>
      %27 = vector.shape_cast %26 : vector<8xf32> to vector<8x1xf32>
      %28 = vector.broadcast %27 : vector<8x1xf32> to vector<8x128xf32>
      %29 = arith.subf %25, %28 : vector<8x128xf32>
      %30 = math.exp %29 : vector<8x128xf32>
      %cst_14 = arith.constant dense<0.000000e+00> : vector<8xf32>
      %31 = vector.multi_reduction <add>, %30, %cst_14 [1] : vector<8x128xf32> to vector<8xf32>
      %32 = vector.shape_cast %31 : vector<8xf32> to vector<8x1xf32>
      %33 = math.log %32 : vector<8x1xf32>
      %34 = arith.addf %27, %33 : vector<8x1xf32>
      %35 = vector.broadcast %34 : vector<8x1xf32> to vector<8x128xf32>
      %36 = arith.subf %25, %35 : vector<8x128xf32>
      %c0_15 = arith.constant 0 : index
      %c0_16 = arith.constant 0 : index
      %37 = vector.load %arg11[%c0_15, %c0_16] : memref<8x128xf32, #tpu.memory_space<vmem>>, vector<8x128xf32>
      tpu.vector_store %arg11[%c0_15, %c0_16], %36 {strides = array<i32>} : memref<8x128xf32, #tpu.memory_space<vmem>>, vector<8x128xf32>,
    } else {
    }
    return
  }
  func.func @transform_0(%arg0: i32) -> (i32, i32) {
    %c0_i32 = arith.constant 0 : i32
    %c0_i32_0 = arith.constant 0 : i32
    %c0_i32_1 = arith.constant 0 : i32
    return %c0_i32, %c0_i32_0 : i32, i32
  }
  func.func @transform_1(%arg0: i32) -> (i32, i32) {
    %c0_i32 = arith.constant 0 : i32
    %c0_i32_0 = arith.constant 0 : i32
    %c0_i32_1 = arith.constant 0 : i32
    return %c0_i32, %c0_i32_0 : i32, i32
  }
  func.func @transform_2(%arg0: i32) -> (i32, i32) {
    %c0_i32 = arith.constant 0 : i32
    %c0_i32_0 = arith.constant 0 : i32
    %c0_i32_1 = arith.constant 0 : i32
    return %c0_i32, %c0_i32_0 : i32, i32
  }
  func.func @transform_3(%arg0: i32) -> (i32, i32) {
    %c0_i32 = arith.constant 0 : i32
    %c0_i32_0 = arith.constant 0 : i32
    %c0_i32_1 = arith.constant 0 : i32
    return %c0_i32, %c0_i32_0 : i32, i32
  }
  func.func @transform_4(%arg0: i32) -> (i32, i32) {
    %c0_i32 = arith.constant 0 : i32
    %c0_i32_0 = arith.constant 0 : i32
    %c0_i32_1 = arith.constant 0 : i32
    return %c0_i32, %c0_i32_0 : i32, i32
  }
  func.func @transform_5(%arg0: i32) -> (i32, i32) {
    %c0_i32 = arith.constant 0 : i32
    %c0_i32_0 = arith.constant 0 : i32
    %c0_i32_1 = arith.constant 0 : i32
    return %c0_i32, %c0_i32_0 : i32, i32
  }
  func.func @transform_6(%arg0: i32) -> (i32, i32) {
    %c0_i32 = arith.constant 0 : i32
    %c0_i32_0 = arith.constant 0 : i32
    %c0_i32_1 = arith.constant 0 : i32
    return %c0_i32, %c0_i32_0 : i32, i32
  }
  func.func @transform_7(%arg0: i32) -> (i32, i32) {
    %c0_i32 = arith.constant 0 : i32
    %c0_i32_0 = arith.constant 0 : i32
    %c0_i32_1 = arith.constant 0 : i32
    return %c0_i32, %c0_i32_0 : i32, i32
  }
  func.func @transform_8(%arg0: i32) -> (i32, i32) {
    %c0_i32 = arith.constant 0 : i32
    %c0_i32_0 = arith.constant 0 : i32
    return %c0_i32, %arg0 : i32, i32
  }
  func.func @transform_9(%arg0: i32) -> (i32, i32) {
    %c0_i32 = arith.constant 0 : i32
    %c0_i32_0 = arith.constant 0 : i32
    return %c0_i32, %arg0 : i32, i32
  }
  func.func @transform_10(%arg0: i32) -> (i32, i32) {
    %c0_i32 = arith.constant 0 : i32
    %c0_i32_0 = arith.constant 0 : i32
    %c0_i32_1 = arith.constant 0 : i32
    return %c0_i32, %c0_i32_0 : i32, i32
  }
  func.func @transform_11(%arg0: i32) -> (i32, i32) {
    %c0_i32 = arith.constant 0 : i32
    %c0_i32_0 = arith.constant 0 : i32
    %c0_i32_1 = arith.constant 0 : i32
    return %c0_i32, %c0_i32_0 : i32, i32
  }
}

</mosaic_0001>

<bundles_post_ra>
// kernel: tpu_custom_call.1
= control target key start
LH: loop header
LB: loop body
LE: loop exit
PB: predicated region body
PF: predicated region fallthrough
CT: control target
= control target key end

     0   :  { %17 = vsyncpa [#allocation5], 0  ;;  %s1475_s0 = inlined_call_operand.hbm [shape: f32[8,128], index: 0, kind: input, shape index: {}]   ;;  %s1476_s1 = inlined_call_operand.hbm [shape: f32[8,128], index: 1, kind: input, shape index: {}]   ;;  %s1477_s2 = inlined_call_operand.hbm [shape: bf16[256,256], index: 2, kind: input, shape index: {}]   ;;  %s1478_s3 = inlined_call_operand.hbm [shape: bf16[128,128], index: 3, kind: input, shape index: {}]   ;;  %s1479_s4 = inlined_call_operand.hbm [shape: bf16[128,128], index: 4, kind: input, shape index: {}]   ;;  %s1480_s5 = inlined_call_operand.vmem [shape: f32[1,256], index: 5, kind: input, shape index: {}]   ;;  %s1481_s6 = inlined_call_operand.vmem [shape: f32[1,128], index: 6, kind: input, shape index: {}]   ;;  %s1482_s7 = inlined_call_operand.vmem [shape: f32[1,128], index: 7, kind: input, shape index: {}]   ;;  %s1483_s8 = inlined_call_operand.hbm [shape: bf16[128,128], index: 8, kind: input, shape index: {}]   ;;  %s1484_s9 = inlined_call_operand.vmem [shape: f32[1,128], index: 9, kind: input, shape index: {}]   ;;  %s1485_s10 = inlined_call_operand.hbm [shape: f32[8,128], index: 10, kind: output, shape index: {0}]   ;;  %s1486_s11 = inlined_call_operand.hbm [shape: f32[8,128], index: 11, kind: output, shape index: {1}]  }
   0x1   :  { %18 = vsyncpa [#allocation8], 0 }
   0x2   :  { %19 = vsyncpa [#allocation11], 0 }
   0x3   :  { %20 = vsyncpa [#allocation14], 0 }
   0x4   :  { %21 = vsyncpa [#allocation6], 0 }
   0x5   :  { %22 = vsyncpa [#allocation17], 0  ;;  %s1224_s17 = smov [#allocation7]   ;;  %s1225_s19 = smov [#allocation10]  }
   0x6   :  { %s39_s18 = sshll.u32 %s1224_s17, 4  ;;  %s60_s20 = sshll.u32 %s1225_s19, 4  ;;  %s40_s18 = int_to_ptr.vmem [resolvable:$true] %s39_s18  ;;  %s1298_s20 = int_to_ptr.vmem [resolvable:$true] %s60_s20 }
   0x7   :  { %s1036_s23 = scalar_lea.hbm %s1476_s1, 128 }
   0x8   :  { %p1037_p0 = scmp.ne.s32.totalorder %s1476_s1, %s1036_s23  ;;  %p1040_p1 = scmp.lt.u32.totalorder %s1036_s23, %s1476_s1 }
   0xa   :  { %p1042_p2 = pnand %p1040_p1, %p1037_p0 }
   0xc   :  { %1045 = shalt.err (!%p1042_p2)
}
   0xd   :  { %s1046_s28 = scalar_lea.vmem %s40_s18, 128  ;;  %p1051_p4 = scmp.lt.s32.totalorder %s40_s18, %s40_s18 }
   0xe   :  { %p1047_p3 = scmp.ne.s32.totalorder %s40_s18, %s1046_s28  ;;  %p1052_p5 = scmp.lt.s32.totalorder %s1046_s28, %s1046_s28 }
  0x10   :  { %p1053_p6 = por %p1052_p5, %p1051_p4 }
  0x12   :  { %p1054_p7 = pnand %p1053_p6, %p1047_p3 }
  0x14   :  { %1057 = shalt.err (!%p1054_p7)
}
  0x15   :  { %42 = dma.hbm_to_vmem [thread:$0]  %s1476_s1, 128, %s40_s18, [#allocation8]  }
  0x16   :  { %s1058_s14 = scalar_lea.hbm %s1478_s3, 1024 }
  0x17   :  { %p1059_p8 = scmp.ne.s32.totalorder %s1478_s3, %s1058_s14  ;;  %p1062_p9 = scmp.lt.u32.totalorder %s1058_s14, %s1478_s3 }
  0x19   :  { %p1064_p10 = pnand %p1062_p9, %p1059_p8 }
  0x1b   :  { %1067 = shalt.err (!%p1064_p10)
}
  0x1c   :  { %s1068_s21 = scalar_lea.vmem %s1298_s20, 1024  ;;  %p1073_p12 = scmp.lt.s32.totalorder %s1298_s20, %s1298_s20 }
  0x1d   :  { %p1069_p11 = scmp.ne.s32.totalorder %s1298_s20, %s1068_s21  ;;  %p1074_p13 = scmp.lt.s32.totalorder %s1068_s21, %s1068_s21 }
  0x1f   :  { %p1075_p0 = por %p1074_p13, %p1073_p12 }
  0x21   :  { %p1076_p1 = pnand %p1075_p0, %p1069_p11 }
  0x23   :  { %1079 = shalt.err (!%p1076_p1)
}
  0x24   :  { %s1226_s1 = smov 64   ;;  %s1227_s18 = smov 4  }
  0x25   :  { %66 = dma.hbm_to_vmem [thread:$0]  %s1478_s3, 1024, %s1298_s20, [#allocation11], %s1226_s1, %s1226_s1, %s1227_s18  }
  0x26   :  { %s1228_s24 = smov [#allocation4]   ;;  %s1229_s26 = smov [#allocation9]  }
  0x27   :  { %s29_s25 = sshll.u32 %s1228_s24, 4  ;;  %s48_s27 = sshll.u32 %s1229_s26, 4  ;;  %s30_s25 = int_to_ptr.vmem [resolvable:$true] %s29_s25  ;;  %s1332_s27 = int_to_ptr.vmem [resolvable:$true] %s48_s27 }
  0x28   :  { %s1080_s30 = scalar_lea.hbm %s1475_s0, 128 }
  0x29   :  { %p1081_p2 = scmp.ne.s32.totalorder %s1475_s0, %s1080_s30  ;;  %p1084_p3 = scmp.lt.u32.totalorder %s1080_s30, %s1475_s0 }
  0x2b   :  { %p1086_p4 = pnand %p1084_p3, %p1081_p2 }
  0x2d   :  { %1089 = shalt.err (!%p1086_p4)
}
  0x2e   :  { %s1090_s3 = scalar_lea.vmem %s30_s25, 128  ;;  %p1095_p6 = scmp.lt.s32.totalorder %s30_s25, %s30_s25 }
  0x2f   :  { %p1091_p5 = scmp.ne.s32.totalorder %s30_s25, %s1090_s3  ;;  %p1096_p7 = scmp.lt.s32.totalorder %s1090_s3, %s1090_s3 }
  0x31   :  { %p1097_p8 = por %p1096_p7, %p1095_p6 }
  0x33   :  { %p1098_p9 = pnand %p1097_p8, %p1091_p5 }
  0x35   :  { %1101 = shalt.err (!%p1098_p9)
}
  0x36   :  { %32 = dma.hbm_to_vmem [thread:$0]  %s1475_s0, 128, %s30_s25, [#allocation5]  }
  0x37   :  { %s1102_s21 = scalar_lea.hbm %s1477_s2, 4096 }
  0x38   :  { %p1103_p10 = scmp.ne.s32.totalorder %s1477_s2, %s1102_s21  ;;  %p1106_p11 = scmp.lt.u32.totalorder %s1102_s21, %s1477_s2 }
  0x3a   :  { %p1108_p12 = pnand %p1106_p11, %p1103_p10 }
  0x3c   :  { %1111 = shalt.err (!%p1108_p12)
}
  0x3d   :  { %s1112_s28 = scalar_lea.vmem %s1332_s27, 4096  ;;  %p1117_p0 = scmp.lt.s32.totalorder %s1332_s27, %s1332_s27 }
  0x3e   :  { %p1113_p13 = scmp.ne.s32.totalorder %s1332_s27, %s1112_s28  ;;  %p1118_p1 = scmp.lt.s32.totalorder %s1112_s28, %s1112_s28 }
  0x40   :  { %p1119_p2 = por %p1118_p1, %p1117_p0 }
  0x42   :  { %p1120_p3 = pnand %p1119_p2, %p1113_p13 }
  0x44   :  { %1123 = shalt.err (!%p1120_p3)
}
  0x45   :  { %s1230_s0 = smov 128   ;;  %s1231_s25 = smov 8  }
  0x46   :  { %54 = dma.hbm_to_vmem [thread:$0]  %s1477_s2, 4096, %s1332_s27, [#allocation8], %s1230_s0, %s1230_s0, %s1231_s25  }
  0x47   :  { %s1232_s12 = smov [#allocation12]   ;;  %s1233_s14 = smov [#allocation13]  }
  0x48   :  { %s72_s13 = sshll.u32 %s1232_s12, 4  ;;  %s90_s15 = sshll.u32 %s1233_s14, 4  ;;  %s73_s13 = int_to_ptr.vmem [resolvable:$true] %s72_s13  ;;  %s1363_s15 = int_to_ptr.vmem [resolvable:$true] %s90_s15 }
  0x49   :  { %s1124_s16 = scalar_lea.hbm %s1479_s4, 1024 }
  0x4a   :  { %p1125_p4 = scmp.ne.s32.totalorder %s1479_s4, %s1124_s16  ;;  %p1128_p5 = scmp.lt.u32.totalorder %s1124_s16, %s1479_s4 }
  0x4c   :  { %p1130_p6 = pnand %p1128_p5, %p1125_p4 }
  0x4e   :  { %1133 = shalt.err (!%p1130_p6)
}
  0x4f   :  { %s1134_s2 = scalar_lea.vmem %s73_s13, 1024  ;;  %p1139_p8 = scmp.lt.s32.totalorder %s73_s13, %s73_s13 }
  0x50   :  { %p1135_p7 = scmp.ne.s32.totalorder %s73_s13, %s1134_s2  ;;  %p1140_p9 = scmp.lt.s32.totalorder %s1134_s2, %s1134_s2 }
  0x52   :  { %p1141_p10 = por %p1140_p9, %p1139_p8 }
  0x54   :  { %p1142_p11 = pnand %p1141_p10, %p1135_p7 }
  0x56   :  { %1145 = shalt.err (!%p1142_p11)
}
  0x57   :  { %78 = dma.hbm_to_vmem [thread:$0]  %s1479_s4, 1024, %s73_s13, [#allocation11], %s1226_s1, %s1226_s1, %s1227_s18  }
  0x58   :  { %s1146_s28 = scalar_lea.hbm %s1483_s8, 1024 }
  0x59   :  { %p1147_p12 = scmp.ne.s32.totalorder %s1483_s8, %s1146_s28  ;;  %p1150_p13 = scmp.lt.u32.totalorder %s1146_s28, %s1483_s8 }
  0x5b   :  { %p1152_p0 = pnand %p1150_p13, %p1147_p12 }
  0x5d   :  { %1155 = shalt.err (!%p1152_p0)
}
  0x5e   :  { %s1156_s12 = scalar_lea.vmem %s1363_s15, 1024  ;;  %p1161_p2 = scmp.lt.s32.totalorder %s1363_s15, %s1363_s15 }
  0x5f   :  { %p1157_p1 = scmp.ne.s32.totalorder %s1363_s15, %s1156_s12  ;;  %p1162_p3 = scmp.lt.s32.totalorder %s1156_s12, %s1156_s12 }
  0x61   :  { %p1163_p4 = por %p1162_p3, %p1161_p2 }
  0x63   :  { %p1164_p5 = pnand %p1163_p4, %p1157_p1 }
  0x65   :  { %1167 = shalt.err (!%p1164_p5)
}
  0x66   :  { %96 = dma.hbm_to_vmem [thread:$0]  %s1483_s8, 1024, %s1363_s15, [#allocation14], %s1226_s1, %s1226_s1, %s1227_s18  }
  0x67   :  { %1212 = dma.done.wait [#allocation5], 128  }
  0x68   :  { %1213 = vsyncadd [#allocation5], 4294967168 }
  0x69   :  { %1214 = dma.done.wait [#allocation8], 4224  }
  0x6a   :  { %1215 = vsyncadd [#allocation8], 4294963072 }
  0x6b   :  { %1216 = dma.done.wait [#allocation11], 2048  }
  0x6c   :  { %1217 = vsyncadd [#allocation11], 4294965248 }
  0x6d   :  { %1218 = dma.done.wait [#allocation14], 1024  }
  0x6e   :  { %1219 = vsyncadd [#allocation14], 4294966272  ;;  %v1234_v0 = vmov 0.0   ;;  %vm1235_vm0 = vmmov 0   ;;  %v950_v1 = vld [vmem:[#allocation9 + $0x4] ss:$8 sps:$4 sm:$0xff]  }
  0x6f   :  { %876 = vmatprep.subr.bf16.mxu1 %v1234_v0  ;;  %892 = vmatprep.mubr.msk.bf16.mxu1 %vm1235_vm0, %v1234_v0  ;;  %v952_v2 = vld [vmem:[#allocation9] ss:$8 sps:$4 sm:$0xff]   ;;  %v953_v3 = vld [vmem:[#allocation9 + $0x14] ss:$8 sps:$4 sm:$0xff]   ;;  %v955_v4 = vld [vmem:[#allocation9 + $0x10] ss:$8 sps:$4 sm:$0xff]  }
  0x70   :  { %377 = vmatprep.subr.bf16.mxu0 %v950_v1  ;;  %v956_v5 = vld [vmem:[#allocation9 + $0x24] ss:$8 sps:$4 sm:$0xff]   ;;  %v958_v6 = vld [vmem:[#allocation9 + $0x20] ss:$8 sps:$4 sm:$0xff]   ;;  %v959_v7 = vld [vmem:[#allocation9 + $0x34] ss:$8 sps:$4 sm:$0xff]  }
  0x71   :  { %378 = vmatpush1.bf16.msra.mxu0 %v952_v2  ;;  %v970_v8 = vld [vmem:[#allocation10] sm:$0xff]   ;;  %v961_v9 = vld [vmem:[#allocation9 + $0x30] ss:$8 sps:$4 sm:$0xff]   ;;  %v974_v11 = vld [vmem:[#allocation10 + $0x8] sm:$0xff]  }
  0x72   :  { %379 = vmatprep.subr.bf16.mxu0 %v953_v3  ;;  %877 = vmatpush3.bf16.msra.mxu1 %v970_v8  ;;  %v962_v10 = vld [vmem:[#allocation9 + $0x44] ss:$8 sps:$4 sm:$0xff]   ;;  %v964_v12 = vld [vmem:[#allocation9 + $0x40] ss:$8 sps:$4 sm:$0xff]   ;;  %v978_v13 = vld [vmem:[#allocation10 + $0x10] sm:$0xff]   ;;  %v126_v3 = vlaneseq }
  0x73   :  { %878 = vmatprep.subr.bf16.mxu1 %v1234_v0  ;;  %v965_v14 = vld [vmem:[#allocation9 + $0x54] ss:$8 sps:$4 sm:$0xff]   ;;  %v967_v15 = vld [vmem:[#allocation9 + $0x50] ss:$8 sps:$4 sm:$0xff]   ;;  %v968_v17 = vld [vmem:[#allocation9 + $0x64] ss:$8 sps:$4 sm:$0xff]  }
  0x74   :  { %v982_v16 = vld [vmem:[#allocation10 + $0x18] sm:$0xff]   ;;  %v971_v18 = vld [vmem:[#allocation9 + $0x60] ss:$8 sps:$4 sm:$0xff]   ;;  %v976_v23 = vld [vmem:[#allocation9 + $0x84] ss:$8 sps:$4 sm:$0xff]  }
  0x75   :  { %380 = vmatpush1.bf16.msra.mxu0 %v955_v4  ;;  %v986_v19 = vld [vmem:[#allocation10 + $0x20] sm:$0xff]   ;;  %v972_v20 = vld [vmem:[#allocation9 + $0x74] ss:$8 sps:$4 sm:$0xff]   ;;  %v975_v21 = vld [vmem:[#allocation9 + $0x70] ss:$8 sps:$4 sm:$0xff]   ;;  %v127_v4 = vshrl.u32 %v126_v3, 7 }
  0x76   :  { %381 = vmatprep.subr.bf16.mxu0 %v956_v5  ;;  %879 = vmatpush3.bf16.msra.mxu1 %v974_v11  ;;  %v990_v22 = vld [vmem:[#allocation10 + $0x28] sm:$0xff]   ;;  %v994_v25 = vld [vmem:[#allocation10 + $0x30] sm:$0xff]   ;;  %v1408_v27 = vld [vmem:[#allocation7] sm:$0xff] }
  0x77   :  { %880 = vmatprep.subr.bf16.mxu1 %v1234_v0  ;;  %v979_v24 = vld [vmem:[#allocation9 + $0x80] ss:$8 sps:$4 sm:$0xff]   ;;  %v123_v26 = vld [vmem:[#allocation4] sm:$0xff]  ;;  %v1413_v29 = vpack.c.bf16 %v1408_v27, %v1408_v27  ;;  %v998_v32 = vld [vmem:[#allocation10 + $0x38] sm:$0xff]   ;;  %v128_v5 = vsub.s32 0, %v127_v4 }
  0x78   :  { %v980_v28 = vld [vmem:[#allocation9 + $0x94] ss:$8 sps:$4 sm:$0xff]   ;;  %v983_v30 = vld [vmem:[#allocation9 + $0x90] ss:$8 sps:$4 sm:$0xff]   ;;  %v214_v31 = vmax.f32 %v123_v26, 0.0  ;;  %v1002_v37 = vld [vmem:[#allocation12] sm:$0xff]  }
  0x79   :  { %382 = vmatpush1.bf16.msra.mxu0 %v958_v6  ;;  %409 = vmatprep.mubr.bf16.mxu0 %v1413_v29  ;;  %v984_v33 = vld [vmem:[#allocation9 + $0xa4] ss:$8 sps:$4 sm:$0xff]   ;;  %v987_v34 = vld [vmem:[#allocation9 + $0xa0] ss:$8 sps:$4 sm:$0xff]   ;;  %v988_v35 = vld [vmem:[#allocation9 + $0xb4] ss:$8 sps:$4 sm:$0xff]  }
  0x7a   :  { %383 = vmatprep.subr.bf16.mxu0 %v959_v7  ;;  %881 = vmatpush3.bf16.msra.mxu1 %v978_v13  ;;  %v215_v36 = vpack.c.bf16 %v214_v31, %v214_v31  ;;  %v991_v38 = vld [vmem:[#allocation9 + $0xb0] ss:$8 sps:$4 sm:$0xff]   ;;  %v1006_v39 = vld [vmem:[#allocation12 + $0x8] sm:$0xff]   ;;  %v996_v43 = vld [vmem:[#allocation9 + $0xd4] ss:$8 sps:$4 sm:$0xff]   ;;  %v132_v7 = vsub.s32 1, %v127_v4 }
  0x7b   :  { %882 = vmatprep.subr.bf16.mxu1 %v1234_v0  ;;  %v992_v40 = vld [vmem:[#allocation9 + $0xc4] ss:$8 sps:$4 sm:$0xff]   ;;  %v995_v41 = vld [vmem:[#allocation9 + $0xc0] ss:$8 sps:$4 sm:$0xff]   ;;  %v1008_v42 = vld [vmem:[#allocation12 + $0x10] sm:$0xff]  }
  0x7c   :  { %v999_v44 = vld [vmem:[#allocation9 + $0xd0] ss:$8 sps:$4 sm:$0xff]   ;;  %v1000_v46 = vld [vmem:[#allocation9 + $0xe4] ss:$8 sps:$4 sm:$0xff]   ;;  %v1003_v47 = vld [vmem:[#allocation9 + $0xe0] ss:$8 sps:$4 sm:$0xff]  }
  0x7d   :  { %384 = vmatpush1.bf16.msra.mxu0 %v961_v9  ;;  %v1009_v45 = vld [vmem:[#allocation12 + $0x18] sm:$0xff]   ;;  %v1010_v48 = vld [vmem:[#allocation12 + $0x20] sm:$0xff]   ;;  %v1011_v51 = vld [vmem:[#allocation12 + $0x28] sm:$0xff]  }
  0x7e   :  { %385 = vmatprep.subr.bf16.mxu0 %v962_v10  ;;  %883 = vmatpush3.bf16.msra.mxu1 %v982_v16  ;;  %v1004_v49 = vld [vmem:[#allocation9 + $0xf4] ss:$8 sps:$4 sm:$0xff]   ;;  %v1007_v50 = vld [vmem:[#allocation9 + $0xf0] ss:$8 sps:$4 sm:$0xff]   ;;  %v1014_v54 = vld [vmem:[#allocation13] sm:$0xff]  }
  0x7f   :  { %884 = vmatprep.subr.bf16.mxu1 %v1234_v0  ;;  %v1012_v52 = vld [vmem:[#allocation12 + $0x30] sm:$0xff]   ;;  %v1013_v53 = vld [vmem:[#allocation12 + $0x38] sm:$0xff]   ;;  %v1015_v55 = vld [vmem:[#allocation13 + $0x8] sm:$0xff]  }
  0x80   :  { %v1016_v56 = vld [vmem:[#allocation13 + $0x10] sm:$0xff]   ;;  %v1017_v57 = vld [vmem:[#allocation13 + $0x18] sm:$0xff]   ;;  %v1018_v58 = vld [vmem:[#allocation13 + $0x20] sm:$0xff]  }
  0x81   :  { %386 = vmatpush1.bf16.msra.mxu0 %v964_v12  ;;  %v1019_v59 = vld [vmem:[#allocation13 + $0x28] sm:$0xff]   ;;  %v1020_v60 = vld [vmem:[#allocation13 + $0x30] sm:$0xff]   ;;  %v1021_v61 = vld [vmem:[#allocation13 + $0x38] sm:$0xff]  }
  0x82   :  { %387 = vmatprep.subr.bf16.mxu0 %v965_v14  ;;  %885 = vmatpush3.bf16.msra.mxu1 %v986_v19  ;;  %v124_v6 = vld [vmem:[%s1480_s5] sm:$0x3] }
  0x83   :  { %886 = vmatprep.subr.bf16.mxu1 %v1234_v0  ;;  %v129_v8 = vrot.slane %v124_v6, %v128_v5  ;;  %v133_v10 = vrot.slane %v124_v6, %v132_v7 }
  0x85   :  { %388 = vmatpush1.bf16.msra.mxu0 %v967_v15 }
  0x86   :  { %389 = vmatprep.subr.bf16.mxu0 %v968_v17  ;;  %887 = vmatpush3.bf16.msra.mxu1 %v990_v22 }
  0x87   :  { %888 = vmatprep.subr.bf16.mxu1 %v1234_v0 }
  0x89   :  { %390 = vmatpush1.bf16.msra.mxu0 %v971_v18 }
  0x8a   :  { %391 = vmatprep.subr.bf16.mxu0 %v972_v20  ;;  %889 = vmatpush3.bf16.msra.mxu1 %v994_v25 }
  0x8b   :  { %890 = vmatprep.subr.bf16.mxu1 %v1234_v0 }
  0x8d   :  { %392 = vmatpush1.bf16.msra.mxu0 %v975_v21 }
  0x8e   :  { %393 = vmatprep.subr.bf16.mxu0 %v976_v23  ;;  %891 = vmatpush3.bf16.msra.mxu1 %v998_v32 }
  0x8f   :  { %896 = vmatprep.subr.bf16.mxu1 %v1234_v0 }
  0x91   :  { %394 = vmatpush1.bf16.msra.mxu0 %v979_v24  ;;  %893 = vmatmul.mubr.bf16.vlgmr.msra.gmra.mrb[0].mxu1 %v215_v36  ;;  %v789_v24 = vld [vmem:[%s1482_s7] ss:$0 sm:$0xff] }
  0x92   :  { %395 = vmatprep.subr.bf16.mxu0 %v980_v28  ;;  %897 = vmatpush3.bf16.msra.mxu1 %v1002_v37  ;;  %v788_v28 = vld [vmem:[%s1481_s6] ss:$0 sm:$0xff]  ;;  %s1236_s6 = smov [#allocation16]  }
  0x93   :  { %898 = vmatprep.subr.bf16.mxu1 %v1234_v0  ;;  %912 = vmatprep.mubr.msk.bf16.mxu1 %vm1235_vm0, %v1234_v0  ;;  %s771_s20 = sshll.u32 %s1236_s6, 4  ;;  %s772_s20 = int_to_ptr.vmem [resolvable:$true] %s771_s20 }
  0x94   :  { %s1168_s16 = scalar_lea.vmem %s772_s20, 128  ;;  %p1173_p7 = scmp.lt.s32.totalorder %s772_s20, %s772_s20 }
  0x95   :  { %396 = vmatpush1.bf16.msra.mxu0 %v983_v30  ;;  %p1169_p6 = scmp.ne.s32.totalorder %s772_s20, %s1168_s16  ;;  %p1174_p8 = scmp.lt.s32.totalorder %s1168_s16, %s1168_s16 }
  0x96   :  { %397 = vmatprep.subr.bf16.mxu0 %v984_v33  ;;  %899 = vmatpush3.bf16.msra.mxu1 %v1006_v39 }
  0x97   :  { %900 = vmatprep.subr.bf16.mxu1 %v1234_v0  ;;  %p1175_p9 = por %p1174_p8, %p1173_p7 }
  0x99   :  { %398 = vmatpush1.bf16.msra.mxu0 %v987_v34  ;;  %p1176_p10 = pnand %p1175_p9, %p1169_p6 }
  0x9a   :  { %399 = vmatprep.subr.bf16.mxu0 %v988_v35  ;;  %901 = vmatpush3.bf16.msra.mxu1 %v1008_v42 }
  0x9b   :  { %902 = vmatprep.subr.bf16.mxu1 %v1234_v0 }
  0x9d   :  { %400 = vmatpush1.bf16.msra.mxu0 %v991_v38 }
  0x9e   :  { %401 = vmatprep.subr.bf16.mxu0 %v992_v40  ;;  %903 = vmatpush3.bf16.msra.mxu1 %v1009_v45  ;;  %v730_v40 = vand.u32 127, %v126_v3 }
  0x9f   :  { %904 = vmatprep.subr.bf16.mxu1 %v1234_v0 }
  0xa0   :  { %vm733_vm1 = vcmp.lt.s32.totalorder %v730_v40, 64 }
  0xa1   :  { %402 = vmatpush1.bf16.msra.mxu0 %v995_v41  ;;  %v840_v41 = vld [vmem:[%s1484_s9] ss:$0 sm:$0xff] }
  0xa2   :  { %403 = vmatprep.subr.bf16.mxu0 %v996_v43  ;;  %905 = vmatpush3.bf16.msra.mxu1 %v1010_v48 }
  0xa3   :  { %906 = vmatprep.subr.bf16.mxu1 %v1234_v0 }
  0xa5   :  { %404 = vmatpush1.bf16.msra.mxu0 %v999_v44 }
  0xa6   :  { %405 = vmatprep.subr.bf16.mxu0 %v1000_v46  ;;  %907 = vmatpush3.bf16.msra.mxu1 %v1011_v51 }
  0xa7   :  { %908 = vmatprep.subr.bf16.mxu1 %v1234_v0 }
  0xa9   :  { %406 = vmatpush1.bf16.msra.mxu0 %v1003_v47 }
  0xaa   :  { %407 = vmatprep.subr.bf16.mxu0 %v1004_v49  ;;  %909 = vmatpush3.bf16.msra.mxu1 %v1012_v52 }
  0xab   :  { %910 = vmatprep.subr.bf16.mxu1 %v1234_v0 }
  0xad   :  { %408 = vmatpush1.bf16.msra.mxu0 %v1007_v50 }
  0xae   :  { %916 = vmatprep.subr.bf16.mxu0 %v1234_v0  ;;  %911 = vmatpush3.bf16.msra.mxu1 %v1013_v53 }
  0xb0   :  { %410 = vmatmul.mubr.bf16.vlgmr.msra.gmra.mrb[0].mxu0 %v215_v36 }
  0xb1   :  { %932 = vmatprep.mubr.msk.bf16.mxu0 %vm1235_vm0, %v1234_v0  ;;  %913 = vmatmul.mubr.bf16.vlgmr.msra.gmra.mrb[4].mxu1 %v1413_v29 }
  0xb2   :  { %917 = vmatpush3.bf16.msra.mxu0 %v1014_v54 }
  0xb3   :  { %918 = vmatprep.subr.bf16.mxu0 %v1234_v0 }
  0xb6   :  { %919 = vmatpush3.bf16.msra.mxu0 %v1015_v55 }
  0xb7   :  { %920 = vmatprep.subr.bf16.mxu0 %v1234_v0 }
  0xba   :  { %921 = vmatpush3.bf16.msra.mxu0 %v1016_v56 }
  0xbb   :  { %922 = vmatprep.subr.bf16.mxu0 %v1234_v0 }
  0xbe   :  { %923 = vmatpush3.bf16.msra.mxu0 %v1017_v57 }
  0xbf   :  { %924 = vmatprep.subr.bf16.mxu0 %v1234_v0 }
  0xc2   :  { %925 = vmatpush3.bf16.msra.mxu0 %v1018_v58 }
  0xc3   :  { %926 = vmatprep.subr.bf16.mxu0 %v1234_v0 }
  0xc6   :  { %927 = vmatpush3.bf16.msra.mxu0 %v1019_v59 }
  0xc7   :  { %928 = vmatprep.subr.bf16.mxu0 %v1234_v0 }
  0xca   :  { %929 = vmatpush3.bf16.msra.mxu0 %v1020_v60 }
  0xcb   :  { %930 = vmatprep.subr.bf16.mxu0 %v1234_v0 }
  0xce   :  { %931 = vmatpush3.bf16.msra.mxu0 %v1021_v61 }
 0x164   :  { %v512_v62 = vpop.f32.mrb[0].mxu1 }
 0x165   :  { %v894_v63 = vpop.f32.mrb[1].mxu1  ;;  %v513_v30 = vadd.f32 %v788_v28, %v512_v62 }
 0x166   :  { %v515_v1 = vpop.f32.mrb[2].mxu1 }
 0x167   :  { %v895_v2 = vpop.f32.mrb[3].mxu1 }
 0x183   :  { %v411_v9 = vpop.f32.mrb[0].mxu0 }
 0x184   :  { %v412_v11 = vadd.f32 %v411_v9, %v129_v8  ;;  %v413_v12 = vpop.f32.mrb[1].mxu0  ;;  %v600_v17 = vpop.f32.mrb[4].mxu1 }
 0x185   :  { %v415_v13 = vpop.f32.mrb[2].mxu0  ;;  %v414_v15 = vadd.f32 %v413_v12, %v133_v10  ;;  %v914_v18 = vpop.f32.mrb[5].mxu1  ;;  %v601_v26 = vadd.f32 %v789_v24, %v600_v17 }
 0x186   :  { %v822_v0 = vmul.f32 -1.442695, %v412_v11  ;;  %v416_v14 = vpop.f32.mrb[3].mxu0  ;;  %v603_v19 = vpop.f32.mrb[6].mxu1 }
 0x187   :  { %v823_v16 = vmul.f32 -1.442695, %v414_v15  ;;  %v915_v20 = vpop.f32.mrb[7].mxu1 }
 0x188   :  { %1022 = vpow2.f32 %v822_v0 }
 0x189   :  { %1024 = vpow2.f32 %v823_v16 }
 0x192   :  { %v1023_v21 = vpop.eup %1022 }
 0x193   :  { %v421_v22 = vadd.f32 1.0, %v1023_v21  ;;  %v1025_v23 = vpop.eup %1024 }
 0x194   :  { %v427_v25 = vadd.f32 1.0, %v1025_v23 }
 0x195   :  { %1026 = vrcp.f32 %v421_v22 }
 0x196   :  { %1028 = vrcp.f32 %v427_v25 }
 0x19f   :  { %v1027_v29 = vpop.eup %1026 }
 0x1a0   :  { %v606_v31 = vmul.f32 %v1027_v29, %v601_v26  ;;  %v1029_v33 = vpop.eup %1028 }
 0x1a1   :  { %v609_v34 = vsub.f32 1.0, %v1029_v33  ;;  %v611_v37 = vmul.f32 %v1029_v33, %v1408_v27 }
 0x1a2   :  { %v607_v32 = vadd.f32 %v606_v31, %v513_v30 }
 0x1a4   :  { %1030 = vtanh.f32 %v607_v32 }
 0x1ae   :  { %v1031_v35 = vpop.eup %1030 }
 0x1af   :  { %v610_v36 = vmul.f32 %v1031_v35, %v609_v34 }
 0x1b1   :  { %v612_v38 = vadd.f32 %v611_v37, %v610_v36 }
 0x1b3   :  { %v616_v39 = vpack.c.bf16 %v612_v38, %v612_v38  ;;  %613 = vst [vmem:[#allocation16] sm:$0xff] %v612_v38 }
 0x1b5   :  { %933 = vmatmul.mubr.bf16.vlgmr.msra.gmra.mrb[4].mxu0 %v616_v39 }
 0x288   :  { %v722_v42 = vpop.f32.mrb[4].mxu0 }
 0x289   :  { %v723_v43 = vadd.f32 %v840_v41, %v722_v42  ;;  %v934_v44 = vpop.f32.mrb[5].mxu0 }
 0x28a   :  { %v725_v45 = vpop.f32.mrb[6].mxu0 }
 0x28b   :  { %v935_v46 = vpop.f32.mrb[7].mxu0  ;;  %v734_v47 = vsel %vm733_vm1, %v723_v43, -1e+30 }
 0x28c   :  { %743 = vmax.xlane.f32.xlu0 %v734_v47 }
 0x319   :  { %v744_v48 = vpop.xlane.xlu0 %743 }
 0x31a   :  { %v745_v49 = vsub.f32 %v734_v47, %v744_v48 }
 0x31c   :  { %v746_v27 = vmul.f32 1.442695, %v745_v49 }
 0x31e   :  { %1032 = vpow2.f32 %v746_v27 }
 0x328   :  { %v1033_v50 = vpop.eup %1032 }
 0x329   :  { %748 = vadd.xlane.f32.xlu0 %v1033_v50 }
 0x32a   :  { %1179 = shalt.err (!%p1176_p10)
}
 0x32b   :  { %s1180_s19 = scalar_lea.hbm %s1486_s11, 128 }
 0x32c   :  { %p1181_p11 = scmp.ne.s32.totalorder %s1486_s11, %s1180_s19  ;;  %p1184_p12 = scmp.lt.u32.totalorder %s1180_s19, %s1486_s11 }
 0x32e   :  { %p1186_p13 = pnand %p1184_p12, %p1181_p11 }
 0x330   :  { %1189 = shalt.err (!%p1186_p13)
}
 0x331   :  { %774 = dma.vmem_to_hbm [thread:$0]  %s772_s20, 128, %s1486_s11, [#allocation17]  }
 0x332   :  { %s1237_s26 = smov [#allocation15]  }
 0x333   :  { %s761_s28 = sshll.u32 %s1237_s26, 4  ;;  %s762_s28 = int_to_ptr.vmem [resolvable:$true] %s761_s28 }
 0x334   :  { %s1190_s0 = scalar_lea.vmem %s762_s28, 128  ;;  %p1195_p1 = scmp.lt.s32.totalorder %s762_s28, %s762_s28 }
 0x335   :  { %p1191_p0 = scmp.ne.s32.totalorder %s762_s28, %s1190_s0  ;;  %p1196_p2 = scmp.lt.s32.totalorder %s1190_s0, %s1190_s0 }
 0x337   :  { %p1197_p3 = por %p1196_p2, %p1195_p1 }
 0x339   :  { %p1198_p4 = pnand %p1197_p3, %p1191_p0 }
 0x3b6   :  { %v749_v51 = vpop.xlane.xlu0 %748 }
 0x3b7   :  { %1034 = vlog2.f32 %v749_v51 }
 0x3c1   :  { %v1035_v52 = vpop.eup %1034 }
 0x3c2   :  { %v751_v53 = vmul.f32 0.6931472, %v1035_v52 }
 0x3c4   :  { %v752_v54 = vadd.f32 %v751_v53, %v744_v48 }
 0x3c6   :  { %v753_v55 = vsub.f32 %v734_v47, %v752_v54 }
 0x3c8   :  { %754 = vst [vmem:[#allocation15] sm:$0xff] %v753_v55 }
 0x3c9   :  { %1201 = shalt.err (!%p1198_p4)
}
 0x3ca   :  { %s1202_s11 = scalar_lea.hbm %s1485_s10, 128 }
 0x3cb   :  { %p1203_p5 = scmp.ne.s32.totalorder %s1485_s10, %s1202_s11  ;;  %p1206_p6 = scmp.lt.u32.totalorder %s1202_s11, %s1485_s10 }
 0x3cd   :  { %p1208_p7 = pnand %p1206_p6, %p1203_p5 }
 0x3cf   :  { %1211 = shalt.err (!%p1208_p7)
}
 0x3d0   :  { %764 = dma.vmem_to_hbm [thread:$0]  %s762_s28, 128, %s1485_s10, [#allocation6]  }
 0x3d1   :  { %1220 = dma.done.wait [#allocation6], 128  }
 0x3d2   :  { %1221 = vsyncadd [#allocation6], 4294967168 }
 0x3d3   :  { %1222 = dma.done.wait [#allocation17], 128  }
 0x3d4   :  { %1223 = vsyncadd [#allocation17], 4294967168 }
 0x3d5   :  { %781 = vsyncpa [#allocation5], 1 }
 0x3d6   :  { %782 = vsyncpa [#allocation8], 1 }
 0x3d7   :  { %783 = vsyncpa [#allocation11], 1 }
 0x3d8   :  { %784 = vsyncpa [#allocation14], 1 }
 0x3d9   :  { %785 = vsyncpa [#allocation6], 1 }
 0x3da   :  { %786 = vsyncpa [#allocation17], 1 }

</bundles_post_ra>
